<compile_context>
chip_gen: v7x
topology: tpu7x:2x2x1
jax: 0.10.0
libtpu: 0.0.40
codegen_flags: <defaults>
</compile_context>

<pallas_src>
import functools

import jax
import jax.numpy as jnp
from jax.experimental import pallas as pl
from jax.experimental.pallas import tpu as pltpu

_SLACK_BYTES = 6 << 20  # headroom inside the budget for Mosaic internal scratch/spills


def _round_up(n, m):
    return (n + m - 1) // m * m


def _nbytes(arr):
    return arr.size * jnp.dtype(arr.dtype).itemsize


def _vmem_budget():
    """~85% of this generation's physical per-core VMEM (leaves compiler headroom)."""
    cap = 64 << 20
    try:
        info = pltpu.get_tpu_info()
        cap = int(getattr(info, "vmem_capacity_bytes", cap)) or cap
    except Exception:
        pass
    return int(cap * 0.85)


# ----------------------------------------------------------------------------
# Kernels
# ----------------------------------------------------------------------------
def _gelu_ln(h, g, be, *, inv_d_mid, apply_ln):
    """Exact (erf) GELU + optional LayerNorm, all in f32.

    Padded lanes of h are exactly 0 (zero-padded W1 cols / b1), so plain sums over
    the padded width equal sums over the real width; gamma/beta are zero-padded so
    padded lanes stay exactly 0 after the affine.
    """
    h = 0.5 * h * (1.0 + jax.lax.erf(h * 0.7071067811865476))
    if apply_ln:
        s1 = jnp.sum(h, axis=-1, keepdims=True)
        s2 = jnp.sum(h * h, axis=-1, keepdims=True)
        mean = s1 * inv_d_mid
        var = jnp.maximum(s2 * inv_d_mid - mean * mean, 0.0)
        h = (h - mean) * jax.lax.rsqrt(var + 1e-5)
        h = h * g + be
    return h


def _ffn_resident_kernel(x_ref, w1_ref, b1_ref, w2_ref, b2_ref, g_ref, be_ref, o_ref,
                         *, inv_d_mid, apply_ln):
    # Both weight matrices resident in VMEM; one grid axis over row tiles.
    h = jnp.dot(x_ref[...].astype(w1_ref.dtype), w1_ref[...],
                preferred_element_type=jnp.float32)
    h = h + b1_ref[...]
    h = _gelu_ln(h, g_ref[...], be_ref[...], inv_d_mid=inv_d_mid, apply_ln=apply_ln)
    out = jnp.dot(h.astype(w2_ref.dtype), w2_ref[...],
                  preferred_element_type=jnp.float32) + b2_ref[...]
    o_ref[...] = out.astype(o_ref.dtype)


def _ffn_stream_kernel(x_ref, w1_ref, b1_ref, w2_ref, b2_ref, g_ref, be_ref, o_ref,
                       h_ref, *, inv_d_mid, apply_ln):
    # W1 resident, W2 streamed in (d_mid_p, tn) column panels along grid axis 1.
    # fc1 + GELU + LN are computed once per row tile (j == 0) into the h scratch.
    @pl.when(pl.program_id(1) == 0)
    def _():
        h = jnp.dot(x_ref[...].astype(w1_ref.dtype), w1_ref[...],
                    preferred_element_type=jnp.float32)
        h = h + b1_ref[...]
        h_ref[...] = _gelu_ln(h, g_ref[...], be_ref[...],
                              inv_d_mid=inv_d_mid, apply_ln=apply_ln)

    out = jnp.dot(h_ref[...].astype(w2_ref.dtype), w2_ref[...],
                  preferred_element_type=jnp.float32) + b2_ref[...]
    o_ref[...] = out.astype(o_ref.dtype)


# ----------------------------------------------------------------------------
# Parameter prep (one-time) + host wrapper
# ----------------------------------------------------------------------------
def prepare_ffn_params(w1, b1, w2, b2, gamma=None, beta=None, *, compute_in_bf16=False):
    """Pad weights to lane-dense 128-multiples once (not per call).

    w1: [input_dim, intermediate_dim], w2: [intermediate_dim, output_dim]
    (transpose of PyTorch's [out, in] Linear layout).
    Returns (padded_params, (d_in, d_mid, d_out)).
    """
    d_in, d_mid = w1.shape
    d_out = w2.shape[1]
    d_in_p, d_mid_p, d_out_p = (_round_up(d, 128) for d in (d_in, d_mid, d_out))

    wdt1 = jnp.bfloat16 if compute_in_bf16 else w1.dtype
    wdt2 = jnp.bfloat16 if compute_in_bf16 else w2.dtype
    w1_p = jnp.pad(w1.astype(wdt1), ((0, d_in_p - d_in), (0, d_mid_p - d_mid)))
    w2_p = jnp.pad(w2.astype(wdt2), ((0, d_mid_p - d_mid), (0, d_out_p - d_out)))
    b1_p = jnp.pad(b1.astype(jnp.float32), (0, d_mid_p - d_mid)).reshape(1, d_mid_p)
    b2_p = jnp.pad(b2.astype(jnp.float32), (0, d_out_p - d_out)).reshape(1, d_out_p)
    if gamma is None:
        gamma = jnp.ones((d_mid,), jnp.float32)
    if beta is None:
        beta = jnp.zeros((d_mid,), jnp.float32)
    g_p = jnp.pad(gamma.astype(jnp.float32), (0, d_mid_p - d_mid)).reshape(1, d_mid_p)
    be_p = jnp.pad(beta.astype(jnp.float32), (0, d_mid_p - d_mid)).reshape(1, d_mid_p)
    return (w1_p, b1_p, w2_p, b2_p, g_p, be_p), (d_in, d_mid, d_out)


@functools.partial(jax.jit, static_argnames=("dims", "block_rows", "apply_ln",
                                             "force_stream", "out_panel"))
def ffn_layer_prepared(x, params, dims, *, block_rows=512, apply_ln=True,
                       force_stream=False, out_panel=None):
    """x: [..., input_dim] -> [..., output_dim] using pre-padded params."""
    w1_p, b1_p, w2_p, b2_p, g_p, be_p = params
    d_in, d_mid, d_out = dims
    d_in_p, d_mid_p = w1_p.shape
    d_out_p = w2_p.shape[1]

    orig_shape = x.shape
    x2 = x.reshape(-1, d_in)
    n_rows = x2.shape[0]
    out_dtype = x.dtype
    x_item = jnp.dtype(x.dtype).itemsize
    out_item = jnp.dtype(out_dtype).itemsize
    w_item = jnp.dtype(w1_p.dtype).itemsize

    # Row-tile granularity: packed dtypes want 16 (bf16) / 32 (8-bit) rows per tile
    # so output stores stay dense vregs instead of vst.msk.
    sub = {1: 32, 2: 16}.get(min(x_item, out_item), 8)

    budget = _vmem_budget()
    vec_bytes = _nbytes(b1_p) + _nbytes(b2_p) + _nbytes(g_p) + _nbytes(be_p)
    w1_bytes = _nbytes(w1_p)
    w2_bytes = _nbytes(w2_p)

    def resident_vmem(tm):
        return (w1_bytes + w2_bytes + vec_bytes        # single-buffered weights
                + 2 * tm * d_in_p * x_item             # double-buffered x tile
                + 2 * tm * d_out_p * out_item          # double-buffered out tile
                + 5 * tm * d_mid_p * 4                 # f32 h through bias/GELU/LN/cast
                + 2 * tm * d_out_p * 4                 # f32 fc2 accumulator
                + _SLACK_BYTES)

    use_stream = force_stream or resident_vmem(sub) > budget

    def pick_tm(vmem_fn):
        tm = min(_round_up(block_rows, sub), _round_up(max(n_rows, 1), sub))
        while tm > sub and vmem_fn(tm) > budget:
            tm = max(_round_up(tm // 2, sub), sub)
        # Ensure >=2 row steps when both tiles carry real rows, so v7x's two
        # TensorCores both get work on small-batch calls (cheap on 1-TC parts).
        if pl.cdiv(max(n_rows, 1), tm) == 1:
            half = _round_up(pl.cdiv(max(n_rows, 1), 2), sub)
            if sub <= half < tm:
                tm = half
        return tm

    def make_cost(n_rows_p):
        return pl.CostEstimate(
            flops=2 * n_rows_p * (d_in_p * d_mid_p + d_mid_p * d_out_p),
            transcendentals=n_rows_p * d_mid_p,  # erf in GELU
            bytes_accessed=(n_rows_p * d_in_p * x_item + w1_bytes + w2_bytes
                            + n_rows_p * d_out_p * out_item),
        )

    if not use_stream:
        tm = pick_tm(resident_vmem)
        n_row_tiles = pl.cdiv(max(n_rows, 1), tm)
        n_rows_p = n_row_tiles * tm
        x_pad = jnp.pad(x2, ((0, n_rows_p - n_rows), (0, d_in_p - d_in)))
        vmem_limit = int(min(max(resident_vmem(tm), 16 << 20), budget))

        def wspec(shape):  # constant block: fetched once, single-buffered
            return pl.BlockSpec(shape, lambda i: (0, 0), pipeline_mode=pl.Buffered(1))

        out = pl.pallas_call(
            functools.partial(_ffn_resident_kernel,
                              inv_d_mid=1.0 / d_mid, apply_ln=apply_ln),
            out_shape=jax.ShapeDtypeStruct((n_rows_p, d_out_p), out_dtype),
            grid_spec=pltpu.PrefetchScalarGridSpec(
                num_scalar_prefetch=0,
                grid=(n_row_tiles,),
                in_specs=[
                    pl.BlockSpec((tm, d_in_p), lambda i: (i, 0)),   # x tile (pipelined)
                    wspec((d_in_p, d_mid_p)),                       # W1 (resident)
                    wspec((1, d_mid_p)),                            # b1
                    wspec((d_mid_p, d_out_p)),                      # W2 (resident)
                    wspec((1, d_out_p)),                            # b2
                    wspec((1, d_mid_p)),                            # ln gamma
                    wspec((1, d_mid_p)),                            # ln beta
                ],
                out_specs=pl.BlockSpec((tm, d_out_p), lambda i: (i, 0)),
            ),
            compiler_params=pltpu.CompilerParams(
                dimension_semantics=("parallel",),
                vmem_limit_bytes=vmem_limit),
            cost_estimate=make_cost(n_rows_p),
        )(x_pad, w1_p, b1_p, w2_p, b2_p, g_p, be_p)
    else:
        # W2-streaming path: grid = (row tiles, output-column panels).
        tn = d_out_p if out_panel is None else min(_round_up(out_panel, 128), d_out_p)
        tn = min(tn, 512) if out_panel is None else tn
        while d_out_p % tn:
            tn -= 128

        def stream_vmem(tm):
            return (w1_bytes + vec_bytes               # W1 resident, single-buffered
                    + 2 * d_mid_p * tn * w_item        # double-buffered W2 panel
                    + 2 * tm * d_in_p * x_item
                    + 2 * tm * tn * out_item
                    + tm * d_mid_p * 4                 # h scratch (f32)
                    + 4 * tm * d_mid_p * 4             # fc1/GELU/LN temporaries
                    + 2 * tm * tn * 4
                    + _SLACK_BYTES)

        tm = pick_tm(stream_vmem)
        if stream_vmem(tm) > budget:
            # TODO(synk): add a k-axis (d_in) accumulation so W1 can be streamed too.
            raise ValueError("FFN weights too large for VMEM even with W2 streaming")
        n_row_tiles = pl.cdiv(max(n_rows, 1), tm)
        n_rows_p = n_row_tiles * tm
        x_pad = jnp.pad(x2, ((0, n_rows_p - n_rows), (0, d_in_p - d_in)))
        vmem_limit = int(min(max(stream_vmem(tm), 16 << 20), budget))

        def wspec2(shape):  # constant block: fetched once, single-buffered
            return pl.BlockSpec(shape, lambda i, j: (0, 0), pipeline_mode=pl.Buffered(1))

        out = pl.pallas_call(
            functools.partial(_ffn_stream_kernel,
                              inv_d_mid=1.0 / d_mid, apply_ln=apply_ln),
            out_shape=jax.ShapeDtypeStruct((n_rows_p, d_out_p), out_dtype),
            grid_spec=pltpu.PrefetchScalarGridSpec(
                num_scalar_prefetch=0,
                grid=(n_row_tiles, d_out_p // tn),
                in_specs=[
                    pl.BlockSpec((tm, d_in_p), lambda i, j: (i, 0)),   # x tile
                    wspec2((d_in_p, d_mid_p)),                         # W1 (resident)
                    wspec2((1, d_mid_p)),                              # b1
                    pl.BlockSpec((d_mid_p, tn), lambda i, j: (0, j)),  # W2 panel (streamed)
                    pl.BlockSpec((1, tn), lambda i, j: (0, j)),        # b2 panel
                    wspec2((1, d_mid_p)),                              # ln gamma
                    wspec2((1, d_mid_p)),                              # ln beta
                ],
                out_specs=pl.BlockSpec((tm, tn), lambda i, j: (i, j)),
                scratch_shapes=[pltpu.VMEM((tm, d_mid_p), jnp.float32)],  # h carry
            ),
            compiler_params=pltpu.CompilerParams(
                dimension_semantics=("parallel", "arbitrary"),
                vmem_limit_bytes=vmem_limit),
            cost_estimate=make_cost(n_rows_p),
        )(x_pad, w1_p, b1_p, w2_p, b2_p, g_p, be_p)

    out = out[:n_rows, :d_out]
    return out.reshape(orig_shape[:-1] + (d_out,))


def ffn_layer(x, w1, b1, w2, b2, gamma=None, beta=None, *, apply_ln=True,
              compute_in_bf16=False, block_rows=512, force_stream=False,
              out_panel=None):
    """One-shot convenience wrapper (re-pads weights every call).

    For repeated use, call prepare_ffn_params() once and ffn_layer_prepared().
    Dropout is eval-mode identity.
    """
    params, dims = prepare_ffn_params(w1, b1, w2, b2, gamma, beta,
                                      compute_in_bf16=compute_in_bf16)
    return ffn_layer_prepared(x, params, dims=dims, block_rows=block_rows,
                              apply_ln=apply_ln, force_stream=force_stream,
                              out_panel=out_panel)


def _reference(x, w1, b1, w2, b2, gamma, beta, apply_ln=True):
    x = x.astype(jnp.float32)
    h = jnp.dot(x, w1.astype(jnp.float32)) + b1
    h = jax.nn.gelu(h, approximate=False)
    if apply_ln:
        mean = jnp.mean(h, axis=-1, keepdims=True)
        var = jnp.mean((h - mean) ** 2, axis=-1, keepdims=True)
        h = (h - mean) * jax.lax.rsqrt(var + 1e-5)
        h = h * gamma + beta
    return jnp.dot(h, w2.astype(jnp.float32)) + b2


if __name__ == "__main__":
    key = jax.random.PRNGKey(0)
    ks = jax.random.split(key, 10)

    batch, seq = 2, 8
    d_in, d_mid, d_out = 32, 64, 32

    x = jax.random.normal(ks[0], (batch, seq, d_in), jnp.float32)
    w1 = jax.random.normal(ks[1], (d_in, d_mid), jnp.float32) * 0.05
    b1 = jax.random.normal(ks[2], (d_mid,), jnp.float32) * 0.02
    w2 = jax.random.normal(ks[3], (d_mid, d_out), jnp.float32) * 0.05
    b2 = jax.random.normal(ks[4], (d_out,), jnp.float32) * 0.02
    gamma = 1.0 + 0.1 * jax.random.normal(ks[5], (d_mid,), jnp.float32)
    beta = 0.1 * jax.random.normal(ks[6], (d_mid,), jnp.float32)

    ref = _reference(x, w1, b1, w2, b2, gamma, beta)

    # --- Case 1: f32, prepared-params path (weights padded once), exact check ---
    params, dims = prepare_ffn_params(w1, b1, w2, b2, gamma, beta)
    out = jax.block_until_ready(ffn_layer_prepared(x, params, dims=dims))
    assert out.shape == (batch, seq, d_out)
    assert jnp.allclose(out, ref, atol=1e-4, rtol=1e-4), "f32 mismatch vs reference"

    # --- Case 2: row count not a multiple of the tile, grid > 1 (padding path) ---
    x2 = jax.random.normal(ks[7], (5, 20, d_in), jnp.float32)  # 100 rows
    out2 = jax.block_until_ready(
        ffn_layer(x2, w1, b1, w2, b2, gamma, beta, block_rows=64))
    ref2 = _reference(x2, w1, b1, w2, b2, gamma, beta)
    assert out2.shape == (5, 20, d_out)
    assert jnp.allclose(out2, ref2, atol=1e-4, rtol=1e-4), "padded-grid mismatch"

    # --- Case 3: native bf16 activations/weights (loose check) ---
    outb = jax.block_until_ready(
        ffn_layer(x.astype(jnp.bfloat16), w1.astype(jnp.bfloat16), b1,
                  w2.astype(jnp.bfloat16), b2, gamma, beta))
    assert outb.shape == (batch, seq, d_out)
    assert jnp.allclose(outb.astype(jnp.float32), ref, atol=1e-1, rtol=1e-1), \
        "bf16 mismatch vs reference"

    # --- Case 4: forced W2-streaming path (2 output panels), f32 exact check ---
    d_out_big = 256
    w2b = jax.random.normal(ks[8], (d_mid, d_out_big), jnp.float32) * 0.05
    b2b = jax.random.normal(ks[9], (d_out_big,), jnp.float32) * 0.02
    out4 = jax.block_until_ready(
        ffn_layer(x, w1, b1, w2b, b2b, gamma, beta, force_stream=True, out_panel=128))
    ref4 = _reference(x, w1, b1, w2b, b2b, gamma, beta)
    assert out4.shape == (batch, seq, d_out_big)
    assert jnp.allclose(out4, ref4, atol=1e-4, rtol=1e-4), "stream-path mismatch"

    # --- Case 5: f32 params through the bf16-compute MXU path (loose check) ---
    out5 = jax.block_until_ready(
        ffn_layer(x, w1, b1, w2, b2, gamma, beta, compute_in_bf16=True))
    assert jnp.allclose(out5, ref, atol=1e-1, rtol=1e-1), "bf16-compute mismatch"

    print("KERNEL_OK")
</pallas_src>

<mosaic_0001>
module attributes {stable_mosaic.version = 11 : i64} {
  func.func @_ffn_resident_kernel(%arg0: i32, %arg1: memref<8x128xf32, #tpu.memory_space<vmem>>, %arg2: memref<128x128xf32, #tpu.memory_space<vmem>>, %arg3: memref<1x128xf32, #tpu.memory_space<vmem>>, %arg4: memref<128x128xf32, #tpu.memory_space<vmem>>, %arg5: memref<1x128xf32, #tpu.memory_space<vmem>>, %arg6: memref<1x128xf32, #tpu.memory_space<vmem>>, %arg7: memref<1x128xf32, #tpu.memory_space<vmem>>, %arg8: memref<8x128xf32, #tpu.memory_space<vmem>>) attributes {dimension_semantics = [#tpu.dimension_semantics<parallel>], iteration_bounds = array<i64: 2>, scalar_prefetch = 0 : i64, scratch_operands = 0 : i64, tpu.core_type = #tpu.core_type<tc>, window_params = [{transform_indices = @transform_0, window_bounds = array<i64: 8, 128>}, {pipeline_mode = #tpu.pipeline_mode<synchronous>, transform_indices = @transform_1, window_bounds = array<i64: 128, 128>}, {pipeline_mode = #tpu.pipeline_mode<synchronous>, transform_indices = @transform_2, window_bounds = array<i64: 1, 128>}, {pipeline_mode = #tpu.pipeline_mode<synchronous>, transform_indices = @transform_3, window_bounds = array<i64: 128, 128>}, {pipeline_mode = #tpu.pipeline_mode<synchronous>, transform_indices = @transform_4, window_bounds = array<i64: 1, 128>}, {pipeline_mode = #tpu.pipeline_mode<synchronous>, transform_indices = @transform_5, window_bounds = array<i64: 1, 128>}, {pipeline_mode = #tpu.pipeline_mode<synchronous>, transform_indices = @transform_6, window_bounds = array<i64: 1, 128>}, {transform_indices = @transform_7, window_bounds = array<i64: 8, 128>}]} {
    %c0 = arith.constant 0 : index
    %c0_0 = arith.constant 0 : index
    %0 = vector.load %arg1[%c0, %c0_0] : memref<8x128xf32, #tpu.memory_space<vmem>>, vector<8x128xf32>
    %c0_1 = arith.constant 0 : index
    %c0_2 = arith.constant 0 : index
    %1 = vector.load %arg2[%c0_1, %c0_2] : memref<128x128xf32, #tpu.memory_space<vmem>>, vector<128x128xf32>
    %cst = arith.constant dense<0.000000e+00> : vector<8x128xf32>
    %2 = tpu.matmul %0, %1, %cst {dimension_numbers = #tpu.dot_dimension_numbers<[1], [0], [0], [1], [0, 0, 1, 1], [], []>} : vector<8x128xf32>, vector<128x128xf32>, vector<8x128xf32> -> vector<8x128xf32>
    %c0_3 = arith.constant 0 : index
    %c0_4 = arith.constant 0 : index
    %3 = vector.load %arg3[%c0_3, %c0_4] : memref<1x128xf32, #tpu.memory_space<vmem>>, vector<1x128xf32>
    %4 = vector.broadcast %3 : vector<1x128xf32> to vector<8x128xf32>
    %5 = arith.addf %2, %4 : vector<8x128xf32>
    %c0_5 = arith.constant 0 : index
    %c0_6 = arith.constant 0 : index
    %6 = vector.load %arg6[%c0_5, %c0_6] : memref<1x128xf32, #tpu.memory_space<vmem>>, vector<1x128xf32>
    %c0_7 = arith.constant 0 : index
    %c0_8 = arith.constant 0 : index
    %7 = vector.load %arg7[%c0_7, %c0_8] : memref<1x128xf32, #tpu.memory_space<vmem>>, vector<1x128xf32>
    %cst_9 = arith.constant 5.000000e-01 : f32
    %8 = vector.broadcast %cst_9 : f32 to vector<8x128xf32>
    %9 = arith.mulf %8, %5 : vector<8x128xf32>
    %cst_10 = arith.constant 0.707106769 : f32
    %10 = vector.broadcast %cst_10 : f32 to vector<8x128xf32>
    %11 = arith.mulf %5, %10 : vector<8x128xf32>
    %12 = math.erf %11 : vector<8x128xf32>
    %cst_11 = arith.constant 1.000000e+00 : f32
    %13 = vector.broadcast %cst_11 : f32 to vector<8x128xf32>
    %14 = arith.addf %13, %12 : vector<8x128xf32>
    %15 = arith.mulf %9, %14 : vector<8x128xf32>
    %cst_12 = arith.constant dense<0.000000e+00> : vector<8xf32>
    %16 = vector.multi_reduction <add>, %15, %cst_12 [1] : vector<8x128xf32> to vector<8xf32>
    %17 = vector.shape_cast %16 : vector<8xf32> to vector<8x1xf32>
    %18 = arith.mulf %15, %15 : vector<8x128xf32>
    %cst_13 = arith.constant dense<0.000000e+00> : vector<8xf32>
    %19 = vector.multi_reduction <add>, %18, %cst_13 [1] : vector<8x128xf32> to vector<8xf32>
    %20 = vector.shape_cast %19 : vector<8xf32> to vector<8x1xf32>
    %cst_14 = arith.constant 1.562500e-02 : f32
    %21 = vector.broadcast %cst_14 : f32 to vector<8x1xf32>
    %22 = arith.mulf %17, %21 : vector<8x1xf32>
    %cst_15 = arith.constant 1.562500e-02 : f32
    %23 = vector.broadcast %cst_15 : f32 to vector<8x1xf32>
    %24 = arith.mulf %20, %23 : vector<8x1xf32>
    %25 = arith.mulf %22, %22 : vector<8x1xf32>
    %26 = arith.subf %24, %25 : vector<8x1xf32>
    %cst_16 = arith.constant 0.000000e+00 : f32
    %27 = vector.broadcast %cst_16 : f32 to vector<8x1xf32>
    %28 = arith.maximumf %26, %27 : vector<8x1xf32>
    %29 = vector.broadcast %22 : vector<8x1xf32> to vector<8x128xf32>
    %30 = arith.subf %15, %29 : vector<8x128xf32>
    %cst_17 = arith.constant 9.99999974E-6 : f32
    %31 = vector.broadcast %cst_17 : f32 to vector<8x1xf32>
    %32 = arith.addf %28, %31 : vector<8x1xf32>
    %33 = math.rsqrt %32 : vector<8x1xf32>
    %34 = vector.broadcast %33 : vector<8x1xf32> to vector<8x128xf32>
    %35 = arith.mulf %30, %34 : vector<8x128xf32>
    %36 = vector.broadcast %6 : vector<1x128xf32> to vector<8x128xf32>
    %37 = arith.mulf %35, %36 : vector<8x128xf32>
    %38 = vector.broadcast %7 : vector<1x128xf32> to vector<8x128xf32>
    %39 = arith.addf %37, %38 : vector<8x128xf32>
    %c0_18 = arith.constant 0 : index
    %c0_19 = arith.constant 0 : index
    %40 = vector.load %arg4[%c0_18, %c0_19] : memref<128x128xf32, #tpu.memory_space<vmem>>, vector<128x128xf32>
    %cst_20 = arith.constant dense<0.000000e+00> : vector<8x128xf32>
    %41 = tpu.matmul %39, %40, %cst_20 {dimension_numbers = #tpu.dot_dimension_numbers<[1], [0], [0], [1], [0, 0, 1, 1], [], []>} : vector<8x128xf32>, vector<128x128xf32>, vector<8x128xf32> -> vector<8x128xf32>
    %c0_21 = arith.constant 0 : index
    %c0_22 = arith.constant 0 : index
    %42 = vector.load %arg5[%c0_21, %c0_22] : memref<1x128xf32, #tpu.memory_space<vmem>>, vector<1x128xf32>
    %43 = vector.broadcast %42 : vector<1x128xf32> to vector<8x128xf32>
    %44 = arith.addf %41, %43 : vector<8x128xf32>
    %c0_23 = arith.constant 0 : index
    %c0_24 = arith.constant 0 : index
    %45 = vector.load %arg8[%c0_23, %c0_24] : memref<8x128xf32, #tpu.memory_space<vmem>>, vector<8x128xf32>
    tpu.vector_store %arg8[%c0_23, %c0_24], %44 {strides = array<i32>} : memref<8x128xf32, #tpu.memory_space<vmem>>, vector<8x128xf32>,
    return
  }
  func.func @transform_0(%arg0: i32) -> (i32, i32) {
    %c0_i32 = arith.constant 0 : i32
    %c0_i32_0 = arith.constant 0 : i32
    return %arg0, %c0_i32 : i32, i32
  }
  func.func @transform_1(%arg0: i32) -> (i32, i32) {
    %c0_i32 = arith.constant 0 : i32
    %c0_i32_0 = arith.constant 0 : i32
    %c0_i32_1 = arith.constant 0 : i32
    return %c0_i32, %c0_i32_0 : i32, i32
  }
  func.func @transform_2(%arg0: i32) -> (i32, i32) {
    %c0_i32 = arith.constant 0 : i32
    %c0_i32_0 = arith.constant 0 : i32
    %c0_i32_1 = arith.constant 0 : i32
    return %c0_i32, %c0_i32_0 : i32, i32
  }
  func.func @transform_3(%arg0: i32) -> (i32, i32) {
    %c0_i32 = arith.constant 0 : i32
    %c0_i32_0 = arith.constant 0 : i32
    %c0_i32_1 = arith.constant 0 : i32
    return %c0_i32, %c0_i32_0 : i32, i32
  }
  func.func @transform_4(%arg0: i32) -> (i32, i32) {
    %c0_i32 = arith.constant 0 : i32
    %c0_i32_0 = arith.constant 0 : i32
    %c0_i32_1 = arith.constant 0 : i32
    return %c0_i32, %c0_i32_0 : i32, i32
  }
  func.func @transform_5(%arg0: i32) -> (i32, i32) {
    %c0_i32 = arith.constant 0 : i32
    %c0_i32_0 = arith.constant 0 : i32
    %c0_i32_1 = arith.constant 0 : i32
    return %c0_i32, %c0_i32_0 : i32, i32
  }
  func.func @transform_6(%arg0: i32) -> (i32, i32) {
    %c0_i32 = arith.constant 0 : i32
    %c0_i32_0 = arith.constant 0 : i32
    %c0_i32_1 = arith.constant 0 : i32
    return %c0_i32, %c0_i32_0 : i32, i32
  }
  func.func @transform_7(%arg0: i32) -> (i32, i32) {
    %c0_i32 = arith.constant 0 : i32
    %c0_i32_0 = arith.constant 0 : i32
    return %arg0, %c0_i32 : i32, i32
  }
}

</mosaic_0001>

<bundles_post_ra>
// kernel: ffn_layer_prepared.1
= control target key start
LH: loop header
LB: loop body
LE: loop exit
PB: predicated region body
PF: predicated region fallthrough
CT: control target
= control target key end

     0   :  { %12 = vsyncpa [#allocation3], 0  ;;  %s1056_s0 = inlined_call_operand.vmem [shape: f32[16,128], index: 0, kind: input, shape index: {}]   ;;  %s1057_s1 = inlined_call_operand.hbm [shape: f32[128,128], index: 1, kind: input, shape index: {}]   ;;  %s1058_s2 = inlined_call_operand.vmem [shape: f32[1,128], index: 2, kind: input, shape index: {}]   ;;  %s1059_s3 = inlined_call_operand.hbm [shape: f32[128,128], index: 3, kind: input, shape index: {}]   ;;  %s1060_s4 = inlined_call_operand.vmem [shape: f32[1,128], index: 4, kind: input, shape index: {}]   ;;  %s1061_s5 = inlined_call_operand.vmem [shape: f32[1,128], index: 5, kind: input, shape index: {}]   ;;  %s1062_s6 = inlined_call_operand.vmem [shape: f32[1,128], index: 6, kind: input, shape index: {}]   ;;  %s1063_s7 = inlined_call_operand.vmem [shape: f32[16,128], index: 7, kind: output, shape index: {}]  }
   0x1   :  { %13 = vsyncpa [#allocation5], 0  ;;  %s928_s24 = smov 0  }
   0x2 LB: > { %s934_s25 = sadd.s32 4294967295, %s879_s24   ;;  %p604_p0 = scmp.ge.s32.totalorder %s879_s24, 1  ;;  %s879_s24 = sphi %s928_s24, %s19_s24  }
   0x3   : > { %p202_p1 = scmp.lt.s32.totalorder %s879_s24, 3  ;;  %s881_s26 = smov [#allocation2]  }
   0x4   : > { %s214_s27 = sshll.u32 %s881_s26, 4  ;;  %p1064_p3 = scmp.eq.s32.totalorder %s934_s25, 0  ;;  %s215_s27 = int_to_ptr.vmem [resolvable:$true] %s214_s27 }
   0x5   : > { %p938_p2 = pnand %p604_p0, %p202_p1  ;;  %s882_s29 = smov [#allocation4]  }
   0x6   : > { %s230_s30 = sshll.u32 %s882_s29, 4  ;;  %s809_s11 = scalar_lea.hbm %s1057_s1, 2048  ;;  %s951_s30 = int_to_ptr.vmem [resolvable:$true] %s230_s30 }
   0x7   : > { %s1066_s28 = scalar_select %p938_p2, 1, 0 }
   0x8   : > { %p779_p4 = pneg %p938_p2  ;;  %p810_p6 = scmp.ne.s32.totalorder %s1057_s1, %s809_s11 }
   0x9   : > { %p816_p10 = scmp.lt.u32.totalorder %s809_s11, %s1057_s1 }
   0xa   : > { %p947_p5 = pnand %p1064_p3, %p779_p4 }
   0xc   : > { %p811_p7 = pneg %p947_p5 }
   0xe   : > { %p812_p8 = pnand %p811_p7, %p810_p6 }
  0x10   : > { %p813_p9 = pneg %p812_p8 }
  0x12   : > { %p818_p11 = pnand %p816_p10, %p813_p9 }
  0x14   : > { %821 = shalt.err (!%p818_p11)
}
  0x15   : > { %s822_s16 = scalar_lea.vmem %s215_s27, 2048  ;;  %p830_p1 = scmp.lt.s32.totalorder %s215_s27, %s215_s27 }
  0x16   : > { %p823_p12 = scmp.ne.s32.totalorder %s215_s27, %s822_s16  ;;  %p831_p4 = scmp.lt.s32.totalorder %s822_s16, %s822_s16 }
  0x18   : > { %p825_p13 = pnand %p823_p12, %p811_p7  ;;  %p832_p3 = por %p831_p4, %p830_p1 }
  0x1a   : > { %p826_p0 = pneg %p825_p13 }
  0x1c   : > { %p833_p2 = pnand %p832_p3, %p826_p0 }
  0x1e   : > { %836 = shalt.err (!%p833_p2)
}
  0x1f   : > { %s883_s17 = smov 128   ;;  %s884_s18 = smov 8  }
  0x20   : > { %782 = dma.hbm_to_vmem [thread:$0]  (!%p947_p5), %s1057_s1, 2048, %s215_s27, [#allocation3], %s883_s17, %s883_s17, %s884_s18  }
  0x21   : > { %s837_s23 = scalar_lea.hbm %s1059_s3, 2048 }
  0x22   : > { %p838_p6 = scmp.ne.s32.totalorder %s1059_s3, %s837_s23  ;;  %p844_p8 = scmp.lt.u32.totalorder %s837_s23, %s1059_s3 }
  0x24   : > { %p840_p2 = pnand %p838_p6, %p811_p7 }
  0x26   : > { %p841_p3 = pneg %p840_p2 }
  0x28   : > { %p846_p9 = pnand %p844_p8, %p841_p3 }
  0x2a   : > { %849 = shalt.err (!%p846_p9)
}
  0x2b   : > { %s850_s27 = scalar_lea.vmem %s951_s30, 2048  ;;  %p858_p13 = scmp.lt.s32.totalorder %s951_s30, %s951_s30 }
  0x2c   : > { %p851_p10 = scmp.ne.s32.totalorder %s951_s30, %s850_s27  ;;  %p859_p0 = scmp.lt.s32.totalorder %s850_s27, %s850_s27 }
  0x2e   : > { %p853_p11 = pnand %p851_p10, %p811_p7  ;;  %p860_p1 = por %p859_p0, %p858_p13 }
  0x30   : > { %p854_p12 = pneg %p853_p11 }
  0x32   : > { %p861_p4 = pnand %p860_p1, %p854_p12 }
  0x34   : > { %864 = shalt.err (!%p861_p4)
}
  0x35   : > { %785 = dma.hbm_to_vmem [thread:$0]  (!%p947_p5), %s1059_s3, 2048, %s951_s30, [#allocation5], %s883_s17, %s883_s17, %s884_s18  }
  0x36   : > { %p1068_p6 = scmp.ne.s32.totalorder %s1066_s28, 0 }
  0x37   : > { %p1069_p2 = scmp.eq.s32.totalorder (!%p1068_p6), %s934_s25, 0 }
  0x38   : > { %262 = sbr.rel (%p1068_p6) target bundleno = 718 (0x2ce), region = 48 }
  0x3f   : > { %870 = dma.done.wait (%p1069_p2), [#allocation3], 2048   ;;  %p1070_p7 = pmov %p1069_p2 }
  0x40   : > { %p1071_p3 = pmov %p1069_p2 }
  0x41   : > { %872 = vsyncadd (%p1070_p7), [#allocation3], 4294965248 }
  0x42   : > { %874 = dma.done.wait (%p1071_p3), [#allocation5], 2048   ;;  %p1072_p8 = pmov %p1069_p2 }
  0x43   : > { %v885_v0 = vmov 0.0|0.0   ;;  %vm886_vm0 = vmmov 0   ;;  %v887_v1 = vmov 0.0   ;;  %v305_v2 = vld [vmem:[#allocation2] sm:$0xff]  ;;  %v306_v3 = vld [vmem:[#allocation2 + $0x8] sm:$0xff]  ;;  %v307_v4 = vld [vmem:[#allocation2 + $0x10] sm:$0xff] }
  0x44   : > { %876 = vsyncadd (%p1072_p8), [#allocation5], 4294965248  ;;  %723 = vmatprep.subr.bf16.mxu0 %v885_v0  ;;  %685 = vmatprep.mubr.msk.f32.mxu0 %vm886_vm0, %v887_v1  ;;  %v724_v5 = vpack.c.bf16 %v306_v3, %v305_v2  ;;  %v308_v6 = vld [vmem:[#allocation2 + $0x18] sm:$0xff]  ;;  %v309_v8 = vld [vmem:[#allocation2 + $0x20] sm:$0xff]  ;;  %p296_p5 = scmp.lt.s32.totalorder %s934_s25, 1 }
  0x45   : > { %747 = vmatprep.subr.bf16.mxu1 %v885_v0  ;;  %720 = vmatprep.mubr.msk.f32.mxu1 %vm886_vm0, %v887_v1  ;;  %v727_v7 = vpack.c.bf16 %v308_v6, %v307_v4  ;;  %v310_v9 = vld [vmem:[#allocation2 + $0x28] sm:$0xff]  ;;  %v311_v11 = vld [vmem:[#allocation2 + $0x30] sm:$0xff]  ;;  %v312_v12 = vld [vmem:[#allocation2 + $0x38] sm:$0xff] }
  0x46   : > { %725 = vmatpush3.bf16.msra.mxu0 %v724_v5  ;;  %v730_v10 = vpack.c.bf16 %v310_v9, %v309_v8  ;;  %v733_v13 = vpack.c.bf16 %v312_v12, %v311_v11  ;;  %v313_v14 = vld [vmem:[#allocation2 + $0x40] sm:$0xff]  ;;  %v314_v15 = vld [vmem:[#allocation2 + $0x48] sm:$0xff]  ;;  %v315_v17 = vld [vmem:[#allocation2 + $0x50] sm:$0xff]  ;;  %s1074_s25 = smov (!%p296_p5, %s934_s25), 1 }
  0x47   : > { %726 = vmatprep.subr.bf16.mxu0 %v885_v0  ;;  %v736_v16 = vpack.c.bf16 %v314_v15, %v313_v14  ;;  %v316_v18 = vld [vmem:[#allocation2 + $0x58] sm:$0xff]  ;;  %v317_v20 = vld [vmem:[#allocation2 + $0x60] sm:$0xff]  ;;  %v318_v21 = vld [vmem:[#allocation2 + $0x68] sm:$0xff]  ;;  %s611_s28 = sshll.u32 %s1074_s25, 3 }
  0x48   : > { %v739_v19 = vpack.c.bf16 %v316_v18, %v315_v17  ;;  %v742_v22 = vpack.c.bf16 %v318_v21, %v317_v20  ;;  %v319_v23 = vld [vmem:[#allocation2 + $0x70] sm:$0xff]  ;;  %v320_v24 = vld [vmem:[#allocation2 + $0x78] sm:$0xff]  ;;  %s299_s13 = scalar_lea.vmem %s1056_s0, %s611_s28  ;;  %v433_v27 = vld [vmem:[#allocation4] sm:$0xff]  ;;  %s303_s26 = scalar_lea.vmem %s1063_s7, %s611_s28 }
  0x49   : > { %v745_v25 = vpack.c.bf16 %v320_v24, %v319_v23  ;;  %v304_v26 = vld [vmem:[%s299_s13] sm:$0xff]  ;;  %v434_v28 = vld [vmem:[#allocation4 + $0x8] sm:$0xff]  ;;  %v435_v40 = vld [vmem:[#allocation4 + $0x10] sm:$0xff] }
  0x4a   : > { %728 = vmatpush3.bf16.msra.mxu0 %v727_v7  ;;  %v748_v29 = vpack.c.bf16 %v434_v28, %v433_v27  ;;  %v613_v30 = vld [vmem:[%s1058_s2] ss:$0 sm:$0xff]  ;;  %v436_v41 = vld [vmem:[#allocation4 + $0x18] sm:$0xff]  ;;  %v438_v44 = vld [vmem:[#allocation4 + $0x28] sm:$0xff] }
  0x4b   : > { %729 = vmatprep.subr.bf16.mxu0 %v885_v0  ;;  %v751_v42 = vpack.c.bf16 %v436_v41, %v435_v40  ;;  %v437_v43 = vld [vmem:[#allocation4 + $0x20] sm:$0xff]  ;;  %v439_v46 = vld [vmem:[#allocation4 + $0x30] sm:$0xff]  ;;  %v440_v47 = vld [vmem:[#allocation4 + $0x38] sm:$0xff] }
  0x4c   : > { %749 = vmatpush3.bf16.msra.mxu1 %v748_v29  ;;  %v754_v45 = vpack.c.bf16 %v438_v44, %v437_v43  ;;  %v757_v48 = vpack.c.bf16 %v440_v47, %v439_v46  ;;  %v441_v49 = vld [vmem:[#allocation4 + $0x40] sm:$0xff]  ;;  %v442_v50 = vld [vmem:[#allocation4 + $0x48] sm:$0xff]  ;;  %v443_v52 = vld [vmem:[#allocation4 + $0x50] sm:$0xff] }
  0x4d   : > { %750 = vmatprep.subr.bf16.mxu1 %v885_v0  ;;  %v760_v51 = vpack.c.bf16 %v442_v50, %v441_v49  ;;  %v444_v53 = vld [vmem:[#allocation4 + $0x58] sm:$0xff]  ;;  %v445_v55 = vld [vmem:[#allocation4 + $0x60] sm:$0xff]  ;;  %v446_v56 = vld [vmem:[#allocation4 + $0x68] sm:$0xff] }
  0x4e   : > { %731 = vmatpush3.bf16.msra.mxu0 %v730_v10  ;;  %v763_v54 = vpack.c.bf16 %v444_v53, %v443_v52  ;;  %v766_v57 = vpack.c.bf16 %v446_v56, %v445_v55  ;;  %v447_v58 = vld [vmem:[#allocation4 + $0x70] sm:$0xff]  ;;  %v448_v59 = vld [vmem:[#allocation4 + $0x78] sm:$0xff]  ;;  %v614_v8 = vld [vmem:[%s1061_s5] ss:$0 sm:$0xff] }
  0x4f   : > { %732 = vmatprep.subr.bf16.mxu0 %v885_v0  ;;  %v769_v60 = vpack.c.bf16 %v448_v59, %v447_v58  ;;  %v616_v12 = vld [vmem:[%s1060_s4] ss:$0 sm:$0xff] }
  0x50   : > { %752 = vmatpush3.bf16.msra.mxu1 %v751_v42 }
  0x51   : > { %753 = vmatprep.subr.bf16.mxu1 %v885_v0 }
  0x52   : > { %734 = vmatpush3.bf16.msra.mxu0 %v733_v13 }
  0x53   : > { %735 = vmatprep.subr.bf16.mxu0 %v885_v0 }
  0x54   : > { %755 = vmatpush3.bf16.msra.mxu1 %v754_v45 }
  0x55   : > { %756 = vmatprep.subr.bf16.mxu1 %v885_v0 }
  0x56   : > { %737 = vmatpush3.bf16.msra.mxu0 %v736_v16 }
  0x57   : > { %738 = vmatprep.subr.bf16.mxu0 %v885_v0 }
  0x58   : > { %758 = vmatpush3.bf16.msra.mxu1 %v757_v48 }
  0x59   : > { %759 = vmatprep.subr.bf16.mxu1 %v885_v0 }
  0x5a   : > { %740 = vmatpush3.bf16.msra.mxu0 %v739_v19 }
  0x5b   : > { %741 = vmatprep.subr.bf16.mxu0 %v885_v0 }
  0x5c   : > { %761 = vmatpush3.bf16.msra.mxu1 %v760_v51 }
  0x5d   : > { %762 = vmatprep.subr.bf16.mxu1 %v885_v0 }
  0x5e   : > { %743 = vmatpush3.bf16.msra.mxu0 %v742_v22 }
  0x5f   : > { %744 = vmatprep.subr.bf16.mxu0 %v885_v0 }
  0x60   : > { %764 = vmatpush3.bf16.msra.mxu1 %v763_v54 }
  0x61   : > { %765 = vmatprep.subr.bf16.mxu1 %v885_v0 }
  0x62   : > { %746 = vmatpush3.bf16.msra.mxu0 %v745_v25 }
  0x64   : > { %767 = vmatpush3.bf16.msra.mxu1 %v766_v57 }
  0x65   : > { %686 = vmatmul.mubr.f32.vlgmr.msra.gmra.mrb[0].mxu0 %v304_v26  ;;  %768 = vmatprep.subr.bf16.mxu1 %v885_v0  ;;  %v615_v0 = vld [vmem:[%s1062_s6] ss:$0 sm:$0xff] }
  0x68   : > { %770 = vmatpush3.bf16.msra.mxu1 %v769_v60 }
 0x138   : > { %v394_v31 = vpop.f32.mrb[0].mxu0 }
 0x139   : > { %v395_v32 = vadd.f32 %v613_v30, %v394_v31  ;;  %v687_v33 = vpop.f32.mrb[1].mxu0 }
 0x13b   : > { %v401_v34 = vmul.f32 0.70710677, %v395_v32  ;;  %v400_v36 = vmul.f32 0.5, %v395_v32 }
 0x13d   : > { %805 = verf.f32 %v401_v34 }
 0x147   : > { %v806_v35 = vpop.eup %805 }
 0x148   : > { %v403_v37 = vadd.f32 1.0, %v806_v35 }
 0x14a   : > { %v404_v38 = vmul.f32 %v403_v37, %v400_v36 }
 0x14c   : > { %405 = vadd.xlane.f32.xlu0 %v404_v38  ;;  %v407_v39 = vmul.f32 %v404_v38, %v404_v38 }
 0x150   : > { %408 = vadd.xlane.f32.xlu0 %v407_v39 }
 0x1d9   : > { %v406_v61 = vpop.xlane.xlu0 %405 }
 0x1da   : > { %v410_v62 = vmul.f32 0.015625, %v406_v61 }
 0x1dc   : > { %v412_v1 = vmul.f32 %v410_v62, %v410_v62  ;;  %v415_v6 = vsub.f32 %v404_v38, %v410_v62 }
 0x1dd   : > { %v409_v63 = vpop.xlane.xlu0 %408 }
 0x1de   : > { %v411_v2 = vmul.f32 0.015625, %v409_v63 }
 0x1e0   : > { %v413_v3 = vsub.f32 %v411_v2, %v412_v1 }
 0x1e2   : > { %v414_v4 = vmax.f32 %v413_v3, 0.0 }
 0x1e4   : > { %v416_v5 = vadd.f32 1e-05, %v414_v4 }
 0x1e6   : > { %807 = vrsqrt.f32 %v416_v5 }
 0x1f0   : > { %v808_v7 = vpop.eup %807 }
 0x1f1   : > { %v418_v9 = vmul.f32 %v808_v7, %v415_v6 }
 0x1f3   : > { %v425_v10 = vmul.f32 %v614_v8, %v418_v9 }
 0x1f5   : > { %v432_v11 = vadd.f32 %v615_v0, %v425_v10 }
 0x1f7   : > { %721 = vmatmul.mubr.f32.vlgmr.msra.gmra.mrb[0].mxu1 %v432_v11 }
 0x2ca   : > { %v522_v13 = vpop.f32.mrb[0].mxu1 }
 0x2cb   : > { %v523_v14 = vadd.f32 %v616_v12, %v522_v13  ;;  %v722_v15 = vpop.f32.mrb[1].mxu1 }
 0x2cd   : > { %526 = vst [vmem:[%s303_s26] sm:$0xff] %v523_v14 }
 0x2ce PF: > { %s19_s24 = sadd.s32 1, %s879_s24  }
 0x2cf   : > { %p16_p9 = scmp.ge.s32.totalorder %s19_s24, 4  }
 0x2d1   :  { %18 = sbr.rel (!%p16_p9) target bundleno = 2 (0x2), region = 87 }
 0x2d8   :  { %546 = vsyncpa [#allocation3], 1 }
 0x2d9   :  { %548 = vsyncpa [#allocation3 + $0x1], 1 }
 0x2da   :  { %549 = vsyncpa [#allocation5], 1 }

</bundles_post_ra>
